<compile_context>
chip_gen: v7x
topology: tpu7x:2x2x1
jax: 0.10.0
libtpu: 0.0.40
codegen_flags: <defaults>
</compile_context>

<pallas_src>
import jax
import jax.numpy as jnp
import numpy as np
from jax.experimental import pallas as pl
from jax.experimental.pallas import tpu as pltpu


def _round_up(x, m):
    return ((x + m - 1) // m) * m


# ----------------------------- Pallas kernel -----------------------------

def _cross_stitch_fused_kernel(x_ref,
                               w1_ref, b1_ref,
                               w2_ref, b2_ref,
                               w3_ref, b3_ref,
                               w4_ref, b4_ref,
                               out_ref):
    """4 fused (block-diagonal user|item) Linear+ReLU layers, then row-wise dot."""

    def layer(h, w_ref, b_ref):
        # Cast activation to the weight dtype (bf16 path on v6e/v7x); accumulate in f32,
        # keep bias-add / ReLU epilogue in f32 (v5e has no bf16 VPU).
        y = jnp.dot(h.astype(w_ref.dtype), w_ref[...],
                    preferred_element_type=jnp.float32) + b_ref[...]
        return jnp.maximum(y, 0.0)

    h = layer(x_ref[...], w1_ref, b1_ref)   # [TB, 2*T*H0]
    h = layer(h, w2_ref, b2_ref)            # [TB, 2*T*H1]
    h = layer(h, w3_ref, b3_ref)            # [TB, 2*H2]
    h = layer(h, w4_ref, b4_ref)            # [TB, 2*H3]  = [user | item]

    half = h.shape[1] // 2
    u = h[:, :half]
    i = h[:, half:]
    # logits = sum(u * i, dim=1) -> (TB, 1)
    out_ref[...] = jnp.sum(u * i, axis=1, keepdims=True)


def cross_stitch_forward(user_emb, item_emb, fused_params):
    """fused_params = (W1, b1, W2, b2, W3, b3, W4, b4) from fold_params()."""
    W1, b1, W2, b2, W3, b3, W4, b4 = fused_params
    B = user_emb.shape[0]

    # Concatenate the two branches on the lane axis (block-diagonal weights handle the rest).
    x = jnp.concatenate([user_emb, item_emb], axis=1).astype(jnp.float32)

    # Batch tiling: multiple of 8 sublanes; 256-row tiles once the batch is large.
    TB = 256 if B >= 256 else _round_up(B, 8)
    B_pad = _round_up(B, TB)
    if B_pad != B:
        x = jnp.pad(x, ((0, B_pad - B), (0, 0)))
    num_blocks = B_pad // TB
    D2 = x.shape[1]

    def const_spec(arr):
        # Weights / biases: full-array block, constant index map -> stay VMEM-resident.
        return pl.BlockSpec(arr.shape, lambda b: (0, 0))

    out = pl.pallas_call(
        _cross_stitch_fused_kernel,
        out_shape=jax.ShapeDtypeStruct((B_pad, 1), jnp.float32),
        grid_spec=pltpu.PrefetchScalarGridSpec(
            num_scalar_prefetch=0,
            grid=(num_blocks,),
            in_specs=[pl.BlockSpec((TB, D2), lambda b: (b, 0)),
                      const_spec(W1), const_spec(b1),
                      const_spec(W2), const_spec(b2),
                      const_spec(W3), const_spec(b3),
                      const_spec(W4), const_spec(b4)],
            out_specs=pl.BlockSpec((TB, 1), lambda b: (b, 0)),
        ),
        compiler_params=pltpu.CompilerParams(
            dimension_semantics=("parallel",)),
    )(x, W1, b1, W2, b2, W3, b3, W4, b4)
    return out[:B]


# ----------------------------- parameter setup (glue) -----------------------------

def make_raw_params(key, num_tasks, latent_dim, hidden_units, eps=1e-5):
    """Torch-layout raw parameters (BatchNorm pre-folded to per-feature scale/shift)."""
    T, D = num_tasks, latent_dim
    H0, H1, H2, H3 = hidden_units
    keys = iter(jax.random.split(key, 64))

    def nrm(shape, scale=0.1):
        return (scale * jax.random.normal(next(keys), shape)).astype(jnp.float32)

    def bn_fold(shape):
        gamma = 1.0 + nrm(shape)
        beta = nrm(shape)
        mean = nrm(shape)
        var = 1.0 + jnp.abs(nrm(shape))
        s = gamma / jnp.sqrt(var + eps)
        t = beta - mean * s
        return s.astype(jnp.float32), t.astype(jnp.float32)

    def branch():
        W1 = nrm((T, D, H0));  b1 = nrm((T, 1, H0));  s1, t1 = bn_fold((T, 1, H0))
        W2 = nrm((T, H0, H1)); b2 = nrm((T, 1, H1));  s2, t2 = bn_fold((T, 1, H1))
        W3 = nrm((T, H1, H2)); b3 = nrm((T, 1, H2));  s3, t3 = bn_fold((T, 1, H2))
        W4 = nrm((T, H2, H3)); b4 = nrm((T, 1, H3))
        return dict(W1=W1, b1=b1, s1=s1, t1=t1,
                    W2=W2, b2=b2, s2=s2, t2=t2,
                    W3=W3, b3=b3, s3=s3, t3=t3,
                    W4=W4, b4=b4)

    # shared cross-stitch Linears (torch layout: [out_features, in_features])
    csW1 = nrm((T, T)); csb1 = nrm((T,))
    csW2 = nrm((T, T)); csb2 = nrm((T,))
    return dict(csW1=csW1, csb1=csb1, csW2=csW2, csb2=csb2, u=branch(), i=branch())


def fold_params(raw, num_tasks, domain_idc, compute_dtype=jnp.float32):
    """Fold BN + cross-stitch scalars into the Linears; build block-diag user|item weights."""
    T, d = num_tasks, domain_idc
    csW1, csb1 = raw['csW1'], raw['csb1']
    csW2, csb2 = raw['csW2'], raw['csb2']

    def fold_branch(p):
        # level 1: fold BN, flatten tasks along the output (lane) axis
        W1f = p['W1'] * p['s1']                      # (T, D, H0)
        b1f = p['b1'] * p['s1'] + p['t1']            # (T, 1, H0)
        D, H0 = W1f.shape[1], W1f.shape[2]
        W1_flat = jnp.transpose(W1f, (1, 0, 2)).reshape(D, T * H0)
        b1_flat = b1f.reshape(1, T * H0)

        # level 2: fold BN, then fold cross-stitch-1 into a dense (T*H0, T*H1) matrix
        W2f = p['W2'] * p['s2']                      # (T, H0, H1)
        b2f = p['b2'] * p['s2'] + p['t2']            # (T, 1, H1)
        H1 = W2f.shape[2]
        # block (t, j) = csW1[j, t] * W2f[j]
        W2_big = jnp.einsum('jt,jkn->tkjn', csW1, W2f).reshape(T * H0, T * H1)
        colsum2 = W2f.sum(axis=1)                    # (T, H1)
        b2_big = (b2f.reshape(T, H1) + csb1[:, None] * colsum2).reshape(1, T * H1)

        # level 3 (domain d): fold BN, then fold cross-stitch-2 row d
        W3f = p['W3'][d] * p['s3'][d]                # (H1, H2)
        b3f = p['b3'][d] * p['s3'][d] + p['t3'][d]   # (1, H2)
        W3_big = jnp.einsum('t,kn->tkn', csW2[d], W3f).reshape(T * H1, W3f.shape[1])
        b3_big = b3f + csb2[d] * W3f.sum(axis=0, keepdims=True)

        # level 4 (domain d)
        W4f = p['W4'][d]                             # (H2, H3)
        b4f = p['b4'][d]                             # (1, H3)
        return (W1_flat, b1_flat, W2_big, b2_big, W3_big, b3_big, W4f, b4f)

    def blockdiag(a, b):
        za = jnp.zeros((a.shape[0], b.shape[1]), a.dtype)
        zb = jnp.zeros((b.shape[0], a.shape[1]), a.dtype)
        return jnp.concatenate(
            [jnp.concatenate([a, za], axis=1),
             jnp.concatenate([zb, b], axis=1)], axis=0)

    up = fold_branch(raw['u'])
    ip = fold_branch(raw['i'])

    fused = []
    for uw, ub, iw, ib in zip(up[0::2], up[1::2], ip[0::2], ip[1::2]):
        fused.append(blockdiag(uw, iw).astype(compute_dtype))        # matmul operand
        fused.append(jnp.concatenate([ub, ib], axis=1).astype(jnp.float32))  # f32 epilogue
    return tuple(fused)


# ----------------------------- pure-JAX reference (torch semantics) -----------------------------

def reference_forward(user_emb, item_emb, raw, num_tasks, domain_idc):
    T, d = num_tasks, domain_idc
    csW1, csb1 = raw['csW1'], raw['csb1']
    csW2, csb2 = raw['csW2'], raw['csb2']

    def branch(x, p):
        h1 = [jax.nn.relu((x @ p['W1'][t] + p['b1'][t]) * p['s1'][t] + p['t1'][t])
              for t in range(T)]
        h2 = []
        for j in range(T):
            acc = sum(h1[t] * csW1[j, t] for t in range(T)) + csb1[j]
            h2.append(jax.nn.relu((acc @ p['W2'][j] + p['b2'][j]) * p['s2'][j] + p['t2'][j]))
        acc = sum(h2[t] * csW2[d, t] for t in range(T)) + csb2[d]
        y = jax.nn.relu((acc @ p['W3'][d] + p['b3'][d]) * p['s3'][d] + p['t3'][d])
        return jax.nn.relu(y @ p['W4'][d] + p['b4'][d])

    u = branch(user_emb, raw['u'])
    i = branch(item_emb, raw['i'])
    return jnp.sum(u * i, axis=1, keepdims=True)


# ----------------------------- main -----------------------------

if __name__ == "__main__":
    config = dict(
        num_users=50,
        num_items=100,
        latent_dim=32,
        hidden_units=[64, 32, 16, 8],
        num_tasks=3,
        num_negative=3,   # num_class = 4 (only relevant to the training branch)
    )
    B = 8
    domain_idc = 1

    root = jax.random.PRNGKey(0)
    k_eu, k_ei, k_ui, k_ii, k_p = jax.random.split(root, 5)

    emb_user = (0.1 * jax.random.normal(
        k_eu, (config['num_users'], config['latent_dim']))).astype(jnp.float32)
    emb_item = (0.1 * jax.random.normal(
        k_ei, (config['num_items'], config['latent_dim']))).astype(jnp.float32)

    user_indices = jax.random.randint(k_ui, (B,), 0, config['num_users'])
    item_indices = jax.random.randint(k_ii, (B,), 0, config['num_items'])

    # TODO(synk): embedding gather is done in XLA; at serving scale, scalar-prefetch the
    # indices and gather rows inside the kernel (PrefetchScalarGridSpec + pl.Element).
    user_emb = emb_user[user_indices]
    item_emb = emb_item[item_indices]

    raw = make_raw_params(k_p, config['num_tasks'], config['latent_dim'],
                          config['hidden_units'])

    # f32 path (exact up to fp reordering of the algebraic folds)
    fused_f32 = fold_params(raw, config['num_tasks'], domain_idc,
                            compute_dtype=jnp.float32)
    out = jax.block_until_ready(cross_stitch_forward(user_emb, item_emb, fused_f32))

    ref = reference_forward(user_emb, item_emb, raw, config['num_tasks'], domain_idc)
    np.testing.assert_allclose(np.asarray(out), np.asarray(ref), rtol=1e-3, atol=1e-5)

    # bf16 MXU-operand path (v6e/v7x): bf16 weights/activations, f32 accumulation+epilogue.
    fused_bf16 = fold_params(raw, config['num_tasks'], domain_idc,
                             compute_dtype=jnp.bfloat16)
    out_bf16 = jax.block_until_ready(cross_stitch_forward(user_emb, item_emb, fused_bf16))
    assert out_bf16.shape == (B, 1) and bool(np.all(np.isfinite(np.asarray(out_bf16))))
    np.testing.assert_allclose(np.asarray(out_bf16), np.asarray(ref), rtol=1e-1, atol=3e-2)

    assert out.shape == (B, 1)
    print("KERNEL_OK")
</pallas_src>

<mosaic_0001>
module attributes {stable_mosaic.version = 11 : i64} {
  func.func @_cross_stitch_fused_kernel(%arg0: i32, %arg1: memref<8x64xf32, #tpu.memory_space<vmem>>, %arg2: memref<64x384xf32, #tpu.memory_space<vmem>>, %arg3: memref<1x384xf32, #tpu.memory_space<vmem>>, %arg4: memref<384x192xf32, #tpu.memory_space<vmem>>, %arg5: memref<1x192xf32, #tpu.memory_space<vmem>>, %arg6: memref<192x32xf32, #tpu.memory_space<vmem>>, %arg7: memref<1x32xf32, #tpu.memory_space<vmem>>, %arg8: memref<32x16xf32, #tpu.memory_space<vmem>>, %arg9: memref<1x16xf32, #tpu.memory_space<vmem>>, %arg10: memref<8x1xf32, #tpu.memory_space<vmem>>) attributes {dimension_semantics = [#tpu.dimension_semantics<parallel>], iteration_bounds = array<i64: 1>, scalar_prefetch = 0 : i64, scratch_operands = 0 : i64, tpu.core_type = #tpu.core_type<tc>, window_params = [{transform_indices = @transform_0, window_bounds = array<i64: 8, 64>}, {pipeline_mode = #tpu.pipeline_mode<synchronous>, transform_indices = @transform_1, window_bounds = array<i64: 64, 384>}, {pipeline_mode = #tpu.pipeline_mode<synchronous>, transform_indices = @transform_2, window_bounds = array<i64: 1, 384>}, {pipeline_mode = #tpu.pipeline_mode<synchronous>, transform_indices = @transform_3, window_bounds = array<i64: 384, 192>}, {pipeline_mode = #tpu.pipeline_mode<synchronous>, transform_indices = @transform_4, window_bounds = array<i64: 1, 192>}, {pipeline_mode = #tpu.pipeline_mode<synchronous>, transform_indices = @transform_5, window_bounds = array<i64: 192, 32>}, {pipeline_mode = #tpu.pipeline_mode<synchronous>, transform_indices = @transform_6, window_bounds = array<i64: 1, 32>}, {pipeline_mode = #tpu.pipeline_mode<synchronous>, transform_indices = @transform_7, window_bounds = array<i64: 32, 16>}, {pipeline_mode = #tpu.pipeline_mode<synchronous>, transform_indices = @transform_8, window_bounds = array<i64: 1, 16>}, {transform_indices = @transform_9, window_bounds = array<i64: 8, 1>}]} {
    %c0 = arith.constant 0 : index
    %c0_0 = arith.constant 0 : index
    %0 = vector.load %arg1[%c0, %c0_0] : memref<8x64xf32, #tpu.memory_space<vmem>>, vector<8x64xf32>
    %c0_1 = arith.constant 0 : index
    %c0_2 = arith.constant 0 : index
    %1 = vector.load %arg2[%c0_1, %c0_2] : memref<64x384xf32, #tpu.memory_space<vmem>>, vector<64x384xf32>
    %cst = arith.constant dense<0.000000e+00> : vector<8x384xf32>
    %2 = tpu.matmul %0, %1, %cst {dimension_numbers = #tpu.dot_dimension_numbers<[1], [0], [0], [1], [0, 0, 1, 1], [], []>} : vector<8x64xf32>, vector<64x384xf32>, vector<8x384xf32> -> vector<8x384xf32>
    %c0_3 = arith.constant 0 : index
    %c0_4 = arith.constant 0 : index
    %3 = vector.load %arg3[%c0_3, %c0_4] : memref<1x384xf32, #tpu.memory_space<vmem>>, vector<1x384xf32>
    %4 = vector.broadcast %3 : vector<1x384xf32> to vector<8x384xf32>
    %5 = arith.addf %2, %4 : vector<8x384xf32>
    %cst_5 = arith.constant 0.000000e+00 : f32
    %6 = vector.broadcast %cst_5 : f32 to vector<8x384xf32>
    %7 = arith.maximumf %5, %6 : vector<8x384xf32>
    %c0_6 = arith.constant 0 : index
    %c0_7 = arith.constant 0 : index
    %8 = vector.load %arg4[%c0_6, %c0_7] : memref<384x192xf32, #tpu.memory_space<vmem>>, vector<384x192xf32>
    %cst_8 = arith.constant dense<0.000000e+00> : vector<8x192xf32>
    %9 = tpu.matmul %7, %8, %cst_8 {dimension_numbers = #tpu.dot_dimension_numbers<[1], [0], [0], [1], [0, 0, 1, 1], [], []>} : vector<8x384xf32>, vector<384x192xf32>, vector<8x192xf32> -> vector<8x192xf32>
    %c0_9 = arith.constant 0 : index
    %c0_10 = arith.constant 0 : index
    %10 = vector.load %arg5[%c0_9, %c0_10] : memref<1x192xf32, #tpu.memory_space<vmem>>, vector<1x192xf32>
    %11 = vector.broadcast %10 : vector<1x192xf32> to vector<8x192xf32>
    %12 = arith.addf %9, %11 : vector<8x192xf32>
    %cst_11 = arith.constant 0.000000e+00 : f32
    %13 = vector.broadcast %cst_11 : f32 to vector<8x192xf32>
    %14 = arith.maximumf %12, %13 : vector<8x192xf32>
    %c0_12 = arith.constant 0 : index
    %c0_13 = arith.constant 0 : index
    %15 = vector.load %arg6[%c0_12, %c0_13] : memref<192x32xf32, #tpu.memory_space<vmem>>, vector<192x32xf32>
    %cst_14 = arith.constant dense<0.000000e+00> : vector<8x32xf32>
    %16 = tpu.matmul %14, %15, %cst_14 {dimension_numbers = #tpu.dot_dimension_numbers<[1], [0], [0], [1], [0, 0, 1, 1], [], []>} : vector<8x192xf32>, vector<192x32xf32>, vector<8x32xf32> -> vector<8x32xf32>
    %c0_15 = arith.constant 0 : index
    %c0_16 = arith.constant 0 : index
    %17 = vector.load %arg7[%c0_15, %c0_16] : memref<1x32xf32, #tpu.memory_space<vmem>>, vector<1x32xf32>
    %18 = vector.broadcast %17 : vector<1x32xf32> to vector<8x32xf32>
    %19 = arith.addf %16, %18 : vector<8x32xf32>
    %cst_17 = arith.constant 0.000000e+00 : f32
    %20 = vector.broadcast %cst_17 : f32 to vector<8x32xf32>
    %21 = arith.maximumf %19, %20 : vector<8x32xf32>
    %c0_18 = arith.constant 0 : index
    %c0_19 = arith.constant 0 : index
    %22 = vector.load %arg8[%c0_18, %c0_19] : memref<32x16xf32, #tpu.memory_space<vmem>>, vector<32x16xf32>
    %cst_20 = arith.constant dense<0.000000e+00> : vector<8x16xf32>
    %23 = tpu.matmul %21, %22, %cst_20 {dimension_numbers = #tpu.dot_dimension_numbers<[1], [0], [0], [1], [0, 0, 1, 1], [], []>} : vector<8x32xf32>, vector<32x16xf32>, vector<8x16xf32> -> vector<8x16xf32>
    %c0_21 = arith.constant 0 : index
    %c0_22 = arith.constant 0 : index
    %24 = vector.load %arg9[%c0_21, %c0_22] : memref<1x16xf32, #tpu.memory_space<vmem>>, vector<1x16xf32>
    %25 = vector.broadcast %24 : vector<1x16xf32> to vector<8x16xf32>
    %26 = arith.addf %23, %25 : vector<8x16xf32>
    %cst_23 = arith.constant 0.000000e+00 : f32
    %27 = vector.broadcast %cst_23 : f32 to vector<8x16xf32>
    %28 = arith.maximumf %26, %27 : vector<8x16xf32>
    %29 = vector.extract_strided_slice %28 {offsets = [0, 0], sizes = [8, 8], strides = [1, 1]} : vector<8x16xf32> to vector<8x8xf32>
    %30 = vector.extract_strided_slice %28 {offsets = [0, 8], sizes = [8, 8], strides = [1, 1]} : vector<8x16xf32> to vector<8x8xf32>
    %31 = arith.mulf %29, %30 : vector<8x8xf32>
    %cst_24 = arith.constant dense<0.000000e+00> : vector<8xf32>
    %32 = vector.multi_reduction <add>, %31, %cst_24 [1] : vector<8x8xf32> to vector<8xf32>
    %33 = vector.shape_cast %32 : vector<8xf32> to vector<8x1xf32>
    %c0_25 = arith.constant 0 : index
    %c0_26 = arith.constant 0 : index
    %34 = vector.load %arg10[%c0_25, %c0_26] : memref<8x1xf32, #tpu.memory_space<vmem>>, vector<8x1xf32>
    tpu.vector_store %arg10[%c0_25, %c0_26], %33 {strides = array<i32>} : memref<8x1xf32, #tpu.memory_space<vmem>>, vector<8x1xf32>,
    return
  }
  func.func @transform_0(%arg0: i32) -> (i32, i32) {
    %c0_i32 = arith.constant 0 : i32
    %c0_i32_0 = arith.constant 0 : i32
    return %arg0, %c0_i32 : i32, i32
  }
  func.func @transform_1(%arg0: i32) -> (i32, i32) {
    %c0_i32 = arith.constant 0 : i32
    %c0_i32_0 = arith.constant 0 : i32
    %c0_i32_1 = arith.constant 0 : i32
    return %c0_i32, %c0_i32_0 : i32, i32
  }
  func.func @transform_2(%arg0: i32) -> (i32, i32) {
    %c0_i32 = arith.constant 0 : i32
    %c0_i32_0 = arith.constant 0 : i32
    %c0_i32_1 = arith.constant 0 : i32
    return %c0_i32, %c0_i32_0 : i32, i32
  }
  func.func @transform_3(%arg0: i32) -> (i32, i32) {
    %c0_i32 = arith.constant 0 : i32
    %c0_i32_0 = arith.constant 0 : i32
    %c0_i32_1 = arith.constant 0 : i32
    return %c0_i32, %c0_i32_0 : i32, i32
  }
  func.func @transform_4(%arg0: i32) -> (i32, i32) {
    %c0_i32 = arith.constant 0 : i32
    %c0_i32_0 = arith.constant 0 : i32
    %c0_i32_1 = arith.constant 0 : i32
    return %c0_i32, %c0_i32_0 : i32, i32
  }
  func.func @transform_5(%arg0: i32) -> (i32, i32) {
    %c0_i32 = arith.constant 0 : i32
    %c0_i32_0 = arith.constant 0 : i32
    %c0_i32_1 = arith.constant 0 : i32
    return %c0_i32, %c0_i32_0 : i32, i32
  }
  func.func @transform_6(%arg0: i32) -> (i32, i32) {
    %c0_i32 = arith.constant 0 : i32
    %c0_i32_0 = arith.constant 0 : i32
    %c0_i32_1 = arith.constant 0 : i32
    return %c0_i32, %c0_i32_0 : i32, i32
  }
  func.func @transform_7(%arg0: i32) -> (i32, i32) {
    %c0_i32 = arith.constant 0 : i32
    %c0_i32_0 = arith.constant 0 : i32
    %c0_i32_1 = arith.constant 0 : i32
    return %c0_i32, %c0_i32_0 : i32, i32
  }
  func.func @transform_8(%arg0: i32) -> (i32, i32) {
    %c0_i32 = arith.constant 0 : i32
    %c0_i32_0 = arith.constant 0 : i32
    %c0_i32_1 = arith.constant 0 : i32
    return %c0_i32, %c0_i32_0 : i32, i32
  }
  func.func @transform_9(%arg0: i32) -> (i32, i32) {
    %c0_i32 = arith.constant 0 : i32
    %c0_i32_0 = arith.constant 0 : i32
    return %arg0, %c0_i32 : i32, i32
  }
}

</mosaic_0001>

<bundles_post_ra>
// kernel: tpu_custom_call.1
= control target key start
LH: loop header
LB: loop body
LE: loop exit
PB: predicated region body
PF: predicated region fallthrough
CT: control target
= control target key end

     0   :  { %v904_v3 = vmov 0.0   ;;  %vm74_vm0 = vcmask 523264   ;;  %v905_v48 = vmov 0.0|0.0   ;;  %vm906_vm1 = vmmov 0   ;;  %s1469_s1 = inlined_call_operand.vmem [shape: f32[64,384], index: 1, kind: input, shape index: {}]   ;;  %s1470_s3 = inlined_call_operand.vmem [shape: f32[384,192], index: 3, kind: input, shape index: {}]   ;;  %s1471_s0 = inlined_call_operand.vmem [shape: f32[8,64], index: 0, kind: input, shape index: {}]   ;;  %s1472_s5 = inlined_call_operand.vmem [shape: f32[192,32], index: 5, kind: input, shape index: {}]   ;;  %s1473_s2 = inlined_call_operand.vmem [shape: f32[1,384], index: 2, kind: input, shape index: {}]   ;;  %s1474_s4 = inlined_call_operand.vmem [shape: f32[1,192], index: 4, kind: input, shape index: {}]   ;;  %s1475_s7 = inlined_call_operand.vmem [shape: f32[32,16], index: 7, kind: input, shape index: {}]   ;;  %s1476_s6 = inlined_call_operand.vmem [shape: f32[1,32], index: 6, kind: input, shape index: {}]   ;;  %s1477_s8 = inlined_call_operand.vmem [shape: f32[1,16], index: 8, kind: input, shape index: {}]   ;;  %s1478_s9 = inlined_call_operand.vmem [shape: f32[8,1], index: 9, kind: output, shape index: {}]  }
   0x1   :  { %v34_v0 = vld [vmem:[%s1469_s1 + $0x8] sm:$0xff]  ;;  %v37_v1 = vld [vmem:[%s1469_s1 + $0x20] sm:$0xff]  ;;  %142 = vmatprep.mubr.f32.mxu1 %v904_v3  ;;  %v36_v5 = vld [vmem:[%s1469_s1 + $0x18] sm:$0xff]  ;;  %vm590_vm2 = vcmask 261120   ;;  %vm670_vm3 = vcmask 64512   ;;  %vm674_vm4 = vcmask 7168  }
   0x2   :  { %v33_v2 = vld [vmem:[%s1469_s1] sm:$0xff]  ;;  %v730_v4 = vpack.c.bf16 %v37_v1, %v34_v0  ;;  %v40_v6 = vld [vmem:[%s1469_s1 + $0x38] sm:$0xff]  ;;  %v43_v7 = vld [vmem:[%s1469_s1 + $0x50] sm:$0xff] }
   0x3   :  { %v732_v8 = vpack.c.bf16 %v36_v5, %v33_v2  ;;  %v734_v9 = vpack.c.bf16 %v43_v7, %v40_v6  ;;  %v39_v10 = vld [vmem:[%s1469_s1 + $0x30] sm:$0xff]  ;;  %v42_v11 = vld [vmem:[%s1469_s1 + $0x48] sm:$0xff]  ;;  %v49_v13 = vld [vmem:[%s1469_s1 + $0x80] sm:$0xff] }
   0x4   :  { %v46_v12 = vld [vmem:[%s1469_s1 + $0x68] sm:$0xff]  ;;  %731 = vmatprep.subr.bf16.mxu1 %v730_v4  ;;  %v736_v14 = vpack.c.bf16 %v42_v11, %v39_v10  ;;  %v45_v16 = vld [vmem:[%s1469_s1 + $0x60] sm:$0xff]  ;;  %v48_v17 = vld [vmem:[%s1469_s1 + $0x78] sm:$0xff] }
   0x5   :  { %733 = vmatpush1.bf16.msra.mxu1 %v732_v8  ;;  %v738_v15 = vpack.c.bf16 %v49_v13, %v46_v12  ;;  %v52_v18 = vld [vmem:[%s1469_s1 + $0x98] sm:$0xff]  ;;  %v55_v19 = vld [vmem:[%s1469_s1 + $0xb0] sm:$0xff]  ;;  %v740_v21 = vpack.c.bf16 %v48_v17, %v45_v16  ;;  %v54_v22 = vld [vmem:[%s1469_s1 + $0xa8] sm:$0xff] }
   0x6   :  { %735 = vmatprep.subr.bf16.mxu1 %v734_v9  ;;  %v51_v20 = vld [vmem:[%s1469_s1 + $0x90] sm:$0xff]  ;;  %v223_v23 = vld [vmem:[%s1470_s3 + $0x8] sm:$0xff]  ;;  %v225_v24 = vld [vmem:[%s1470_s3 + $0x18] sm:$0xff]  ;;  %v742_v25 = vpack.c.bf16 %v55_v19, %v52_v18 }
   0x7   :  { %v758_v26 = vpack.c.bf16 %v225_v24, %v223_v23  ;;  %v222_v27 = vld [vmem:[%s1470_s3] sm:$0xff]  ;;  %v224_v28 = vld [vmem:[%s1470_s3 + $0x10] sm:$0xff]  ;;  %v227_v29 = vld [vmem:[%s1470_s3 + $0x28] sm:$0xff]  ;;  %v744_v37 = vpack.c.bf16 %v54_v22, %v51_v20 }
   0x8   :  { %v760_v30 = vpack.c.bf16 %v224_v28, %v222_v27  ;;  %v229_v31 = vld [vmem:[%s1470_s3 + $0x38] sm:$0xff]  ;;  %v226_v32 = vld [vmem:[%s1470_s3 + $0x20] sm:$0xff]  ;;  %v228_v33 = vld [vmem:[%s1470_s3 + $0x30] sm:$0xff] }
   0x9   :  { %737 = vmatpush1.bf16.msra.mxu1 %v736_v14  ;;  %759 = vmatprep.subr.bf16.mxu0 %v758_v26  ;;  %v762_v34 = vpack.c.bf16 %v229_v31, %v227_v29  ;;  %v231_v35 = vld [vmem:[%s1470_s3 + $0x48] sm:$0xff]  ;;  %v233_v36 = vld [vmem:[%s1470_s3 + $0x58] sm:$0xff]  ;;  %v764_v38 = vpack.c.bf16 %v228_v33, %v226_v32  ;;  %v35_v39 = vld [vmem:[%s1469_s1 + $0x10] sm:$0xff] }
   0xa   :  { %739 = vmatprep.subr.bf16.mxu1 %v738_v15  ;;  %761 = vmatpush1.bf16.msra.mxu0 %v760_v30  ;;  %v38_v40 = vld [vmem:[%s1469_s1 + $0x28] sm:$0xff]  ;;  %v766_v41 = vpack.c.bf16 %v233_v36, %v231_v35  ;;  %v230_v42 = vld [vmem:[%s1470_s3 + $0x40] sm:$0xff]  ;;  %v232_v43 = vld [vmem:[%s1470_s3 + $0x50] sm:$0xff] }
   0xb   :  { %763 = vmatprep.subr.bf16.mxu0 %v762_v34  ;;  %v235_v44 = vld [vmem:[%s1470_s3 + $0x68] sm:$0xff]  ;;  %v237_v45 = vld [vmem:[%s1470_s3 + $0x78] sm:$0xff]  ;;  %v1058_v46 = vld [vmem:[%s1471_s0] sm:$0xff]  ;;  %v747_v47 = vpack.c.bf16 %v38_v40, %v35_v39  ;;  %v768_v51 = vpack.c.bf16 %v232_v43, %v230_v42 }
   0xc   :  { %v41_v49 = vld [vmem:[%s1469_s1 + $0x40] sm:$0xff]  ;;  %v44_v50 = vld [vmem:[%s1469_s1 + $0x58] sm:$0xff]  ;;  %v770_v52 = vpack.c.bf16 %v237_v45, %v235_v44  ;;  %v236_v54 = vld [vmem:[%s1470_s3 + $0x70] sm:$0xff] }
   0xd   :  { %741 = vmatpush1.bf16.msra.mxu1 %v740_v21  ;;  %v234_v53 = vld [vmem:[%s1470_s3 + $0x60] sm:$0xff]  ;;  %v239_v55 = vld [vmem:[%s1470_s3 + $0x88] sm:$0xff]  ;;  %v241_v56 = vld [vmem:[%s1470_s3 + $0x98] sm:$0xff]  ;;  %v750_v57 = vpack.c.bf16 %v44_v50, %v41_v49 }
   0xe   :  { %743 = vmatprep.subr.bf16.mxu1 %v742_v25  ;;  %765 = vmatpush1.bf16.msra.mxu0 %v764_v38  ;;  %v47_v58 = vld [vmem:[%s1469_s1 + $0x70] sm:$0xff]  ;;  %v50_v59 = vld [vmem:[%s1469_s1 + $0x88] sm:$0xff]  ;;  %v772_v60 = vpack.c.bf16 %v236_v54, %v234_v53  ;;  %v774_v61 = vpack.c.bf16 %v241_v56, %v239_v55  ;;  %v238_v62 = vld [vmem:[%s1470_s3 + $0x80] sm:$0xff] }
   0xf   :  { %767 = vmatprep.subr.bf16.mxu0 %v766_v41  ;;  %v240_v63 = vld [vmem:[%s1470_s3 + $0x90] sm:$0xff]  ;;  %v243_v0 = vld [vmem:[%s1470_s3 + $0xa8] sm:$0xff]  ;;  %v245_v1 = vld [vmem:[%s1470_s3 + $0xb8] sm:$0xff]  ;;  %v753_v2 = vpack.c.bf16 %v50_v59, %v47_v58 }
  0x10   :  { %v53_v4 = vld [vmem:[%s1469_s1 + $0xa0] sm:$0xff]  ;;  %v56_v5 = vld [vmem:[%s1469_s1 + $0xb8] sm:$0xff]  ;;  %v776_v6 = vpack.c.bf16 %v240_v63, %v238_v62  ;;  %v778_v7 = vpack.c.bf16 %v245_v1, %v243_v0  ;;  %v244_v9 = vld [vmem:[%s1470_s3 + $0xb0] sm:$0xff] }
  0x11   :  { %745 = vmatpush1.bf16.msra.mxu1 %v744_v37  ;;  %v242_v8 = vld [vmem:[%s1470_s3 + $0xa0] sm:$0xff]  ;;  %v247_v10 = vld [vmem:[%s1470_s3 + $0xc8] sm:$0xff]  ;;  %v249_v11 = vld [vmem:[%s1470_s3 + $0xd8] sm:$0xff]  ;;  %v756_v12 = vpack.c.bf16 %v56_v5, %v53_v4 }
  0x12   :  { %746 = vmatprep.subr.bf16.mxu1 %v905_v48  ;;  %769 = vmatpush1.bf16.msra.mxu0 %v768_v51  ;;  %v780_v13 = vpack.c.bf16 %v244_v9, %v242_v8  ;;  %v782_v14 = vpack.c.bf16 %v249_v11, %v247_v10  ;;  %v246_v15 = vld [vmem:[%s1470_s3 + $0xc0] sm:$0xff]  ;;  %v248_v16 = vld [vmem:[%s1470_s3 + $0xd0] sm:$0xff]  ;;  %v251_v17 = vld [vmem:[%s1470_s3 + $0xe8] sm:$0xff] }
  0x13   :  { %771 = vmatprep.subr.bf16.mxu0 %v770_v52  ;;  %v253_v18 = vld [vmem:[%s1470_s3 + $0xf8] sm:$0xff]  ;;  %v784_v19 = vpack.c.bf16 %v248_v16, %v246_v15  ;;  %v250_v21 = vld [vmem:[%s1470_s3 + $0xe0] sm:$0xff]  ;;  %v252_v22 = vld [vmem:[%s1470_s3 + $0xf0] sm:$0xff] }
  0x14   :  { %680 = vmatmul.mubr.msk.f32.vlgmr.msra.gmra.mrb[0].mxu1 %vm74_vm0, %v1058_v46  ;;  %v786_v20 = vpack.c.bf16 %v253_v18, %v251_v17  ;;  %v255_v23 = vld [vmem:[%s1470_s3 + $0x108] sm:$0xff]  ;;  %v257_v24 = vld [vmem:[%s1470_s3 + $0x118] sm:$0xff]  ;;  %v788_v25 = vpack.c.bf16 %v252_v22, %v250_v21  ;;  %v254_v27 = vld [vmem:[%s1470_s3 + $0x100] sm:$0xff] }
  0x15   :  { %748 = vmatpush3.bf16.msra.mxu1 %v747_v47  ;;  %716 = vmatprep.mubr.msk.f32.mxu1 %vm906_vm1, %v904_v3  ;;  %v790_v26 = vpack.c.bf16 %v257_v24, %v255_v23  ;;  %v256_v28 = vld [vmem:[%s1470_s3 + $0x110] sm:$0xff]  ;;  %v259_v29 = vld [vmem:[%s1470_s3 + $0x128] sm:$0xff]  ;;  %v261_v30 = vld [vmem:[%s1470_s3 + $0x138] sm:$0xff] }
  0x16   :  { %749 = vmatprep.subr.bf16.mxu1 %v905_v48  ;;  %773 = vmatpush1.bf16.msra.mxu0 %v772_v60  ;;  %v792_v31 = vpack.c.bf16 %v256_v28, %v254_v27  ;;  %v794_v32 = vpack.c.bf16 %v261_v30, %v259_v29  ;;  %v258_v33 = vld [vmem:[%s1470_s3 + $0x120] sm:$0xff]  ;;  %v260_v34 = vld [vmem:[%s1470_s3 + $0x130] sm:$0xff]  ;;  %v263_v35 = vld [vmem:[%s1470_s3 + $0x148] sm:$0xff] }
  0x17   :  { %775 = vmatprep.subr.bf16.mxu0 %v774_v61  ;;  %v265_v36 = vld [vmem:[%s1470_s3 + $0x158] sm:$0xff]  ;;  %v796_v37 = vpack.c.bf16 %v260_v34, %v258_v33  ;;  %v262_v39 = vld [vmem:[%s1470_s3 + $0x140] sm:$0xff]  ;;  %v264_v40 = vld [vmem:[%s1470_s3 + $0x150] sm:$0xff] }
  0x18   :  { %v798_v38 = vpack.c.bf16 %v265_v36, %v263_v35  ;;  %v267_v41 = vld [vmem:[%s1470_s3 + $0x168] sm:$0xff]  ;;  %v269_v42 = vld [vmem:[%s1470_s3 + $0x178] sm:$0xff]  ;;  %v800_v43 = vpack.c.bf16 %v264_v40, %v262_v39  ;;  %v266_v45 = vld [vmem:[%s1470_s3 + $0x160] sm:$0xff] }
  0x19   :  { %751 = vmatpush3.bf16.msra.mxu1 %v750_v57  ;;  %v802_v44 = vpack.c.bf16 %v269_v42, %v267_v41  ;;  %v271_v47 = vld [vmem:[%s1470_s3 + $0x188] sm:$0xff]  ;;  %v273_v49 = vld [vmem:[%s1470_s3 + $0x198] sm:$0xff]  ;;  %v270_v52 = vld [vmem:[%s1470_s3 + $0x180] sm:$0xff] }
  0x1a   :  { %752 = vmatprep.subr.bf16.mxu1 %v905_v48  ;;  %777 = vmatpush1.bf16.msra.mxu0 %v776_v6  ;;  %v806_v51 = vpack.c.bf16 %v273_v49, %v271_v47  ;;  %v272_v53 = vld [vmem:[%s1470_s3 + $0x190] sm:$0xff]  ;;  %v275_v54 = vld [vmem:[%s1470_s3 + $0x1a8] sm:$0xff]  ;;  %v277_v55 = vld [vmem:[%s1470_s3 + $0x1b8] sm:$0xff] }
  0x1b   :  { %779 = vmatprep.subr.bf16.mxu0 %v778_v7  ;;  %v808_v56 = vpack.c.bf16 %v272_v53, %v270_v52  ;;  %v810_v57 = vpack.c.bf16 %v277_v55, %v275_v54  ;;  %v274_v58 = vld [vmem:[%s1470_s3 + $0x1a0] sm:$0xff]  ;;  %v276_v59 = vld [vmem:[%s1470_s3 + $0x1b0] sm:$0xff]  ;;  %v279_v60 = vld [vmem:[%s1470_s3 + $0x1c8] sm:$0xff] }
  0x1c   :  { %v281_v61 = vld [vmem:[%s1470_s3 + $0x1d8] sm:$0xff]  ;;  %v812_v62 = vpack.c.bf16 %v276_v59, %v274_v58  ;;  %v278_v0 = vld [vmem:[%s1470_s3 + $0x1c0] sm:$0xff]  ;;  %v280_v1 = vld [vmem:[%s1470_s3 + $0x1d0] sm:$0xff] }
  0x1d   :  { %754 = vmatpush3.bf16.msra.mxu1 %v753_v2  ;;  %v814_v63 = vpack.c.bf16 %v281_v61, %v279_v60  ;;  %v816_v2 = vpack.c.bf16 %v280_v1, %v278_v0  ;;  %v283_v4 = vld [vmem:[%s1470_s3 + $0x1e8] sm:$0xff]  ;;  %v285_v5 = vld [vmem:[%s1470_s3 + $0x1f8] sm:$0xff]  ;;  %v282_v7 = vld [vmem:[%s1470_s3 + $0x1e0] sm:$0xff] }
  0x1e   :  { %755 = vmatprep.subr.bf16.mxu1 %v905_v48  ;;  %781 = vmatpush1.bf16.msra.mxu0 %v780_v13  ;;  %v818_v6 = vpack.c.bf16 %v285_v5, %v283_v4  ;;  %v284_v8 = vld [vmem:[%s1470_s3 + $0x1f0] sm:$0xff]  ;;  %v287_v10 = vld [vmem:[%s1470_s3 + $0x208] sm:$0xff]  ;;  %v289_v11 = vld [vmem:[%s1470_s3 + $0x218] sm:$0xff] }
  0x1f   :  { %783 = vmatprep.subr.bf16.mxu0 %v782_v14  ;;  %v820_v9 = vpack.c.bf16 %v284_v8, %v282_v7  ;;  %v474_v13 = vld [vmem:[%s1472_s5] sm:$0xff]  ;;  %v475_v14 = vld [vmem:[%s1472_s5 + $0x8] sm:$0xff]  ;;  %v476_v15 = vld [vmem:[%s1472_s5 + $0x10] sm:$0xff] }
  0x20   :  { %v855_v16 = vpack.c.bf16 %v475_v14, %v474_v13  ;;  %v477_v17 = vld [vmem:[%s1472_s5 + $0x18] sm:$0xff]  ;;  %v480_v22 = vld [vmem:[%s1472_s5 + $0x30] sm:$0xff]  ;;  %v286_v54 = vld [vmem:[%s1470_s3 + $0x200] sm:$0xff] }
  0x21   :  { %757 = vmatpush3.bf16.msra.mxu1 %v756_v12  ;;  %v822_v12 = vpack.c.bf16 %v289_v11, %v287_v10  ;;  %v858_v18 = vpack.c.bf16 %v477_v17, %v476_v15  ;;  %v481_v23 = vld [vmem:[%s1472_s5 + $0x38] sm:$0xff]  ;;  %v484_v28 = vld [vmem:[%s1472_s5 + $0x50] sm:$0xff]  ;;  %v295_v1 = vld [vmem:[%s1470_s3 + $0x248] sm:$0xff] }
  0x22   :  { %854 = vmatprep.subr.bf16.mxu1 %v905_v48  ;;  %785 = vmatpush1.bf16.msra.mxu0 %v784_v19  ;;  %v478_v19 = vld [vmem:[%s1472_s5 + $0x20] sm:$0xff]  ;;  %v864_v24 = vpack.c.bf16 %v481_v23, %v480_v22  ;;  %v485_v29 = vld [vmem:[%s1472_s5 + $0x58] sm:$0xff]  ;;  %v488_v34 = vld [vmem:[%s1472_s5 + $0x70] sm:$0xff] }
  0x23   :  { %787 = vmatprep.subr.bf16.mxu0 %v786_v20  ;;  %v479_v20 = vld [vmem:[%s1472_s5 + $0x28] sm:$0xff]  ;;  %v870_v30 = vpack.c.bf16 %v485_v29, %v484_v28  ;;  %v489_v35 = vld [vmem:[%s1472_s5 + $0x78] sm:$0xff]  ;;  %v492_v40 = vld [vmem:[%s1472_s5 + $0x90] sm:$0xff] }
  0x24   :  { %717 = vmatmul.mubr.msk.f32.vlgmr.msra.gmra.mrb[2].mxu1 %vm74_vm0, %v1058_v46  ;;  %v268_v46 = vld [vmem:[%s1470_s3 + $0x170] sm:$0xff]  ;;  %v861_v21 = vpack.c.bf16 %v479_v20, %v478_v19  ;;  %v876_v36 = vpack.c.bf16 %v489_v35, %v488_v34  ;;  %v493_v41 = vld [vmem:[%s1472_s5 + $0x98] sm:$0xff]  ;;  %v299_v8 = vld [vmem:[%s1470_s3 + $0x268] sm:$0xff] }
  0x25   :  { %v804_v50 = vpack.c.bf16 %v268_v46, %v266_v45  ;;  %856 = vmatpush1.bf16.msra.mxu1 %v855_v16  ;;  %v882_v42 = vpack.c.bf16 %v493_v41, %v492_v40  ;;  %v1321_v46 = vld [vmem:[%s1473_s2] sm:$0x7]  ;;  %v288_v55 = vld [vmem:[%s1470_s3 + $0x210] sm:$0xff]  ;;  %v293_v58 = vld [vmem:[%s1470_s3 + $0x238] sm:$0xff] }
  0x26   :  { %789 = vmatpush1.bf16.msra.mxu0 %v788_v25  ;;  %857 = vmatprep.subr.bf16.mxu1 %v905_v48  ;;  %v482_v25 = vld [vmem:[%s1472_s5 + $0x40] sm:$0xff]  ;;  %v824_v60 = vpack.c.bf16 %v288_v55, %v286_v54  ;;  %v292_v0 = vld [vmem:[%s1470_s3 + $0x230] sm:$0xff]  ;;  %v303_v14 = vld [vmem:[%s1470_s3 + $0x288] sm:$0xff] }
  0x27   :  { %791 = vmatprep.subr.bf16.mxu0 %v790_v26  ;;  %v483_v26 = vld [vmem:[%s1472_s5 + $0x48] sm:$0xff]  ;;  %v296_v7 = vld [vmem:[%s1470_s3 + $0x250] sm:$0xff]  ;;  %v305_v15 = vld [vmem:[%s1470_s3 + $0x298] sm:$0xff] }
  0x28   :  { %v867_v27 = vpack.c.bf16 %v483_v26, %v482_v25  ;;  %v300_v13 = vld [vmem:[%s1470_s3 + $0x270] sm:$0xff]  ;;  %v302_v19 = vld [vmem:[%s1470_s3 + $0x280] sm:$0xff]  ;;  %v307_v22 = vld [vmem:[%s1470_s3 + $0x2a8] sm:$0xff] }
  0x29   :  { %859 = vmatpush1.bf16.msra.mxu1 %v858_v18  ;;  %v838_v18 = vpack.c.bf16 %v305_v15, %v303_v14  ;;  %v304_v20 = vld [vmem:[%s1470_s3 + $0x290] sm:$0xff]  ;;  %v309_v23 = vld [vmem:[%s1470_s3 + $0x2b8] sm:$0xff]  ;;  %v306_v26 = vld [vmem:[%s1470_s3 + $0x2a0] sm:$0xff] }
  0x2a   :  { %793 = vmatpush1.bf16.msra.mxu0 %v792_v31  ;;  %860 = vmatprep.subr.bf16.mxu1 %v905_v48  ;;  %v486_v31 = vld [vmem:[%s1472_s5 + $0x60] sm:$0xff]  ;;  %v842_v25 = vpack.c.bf16 %v309_v23, %v307_v22  ;;  %v311_v28 = vld [vmem:[%s1470_s3 + $0x2c8] sm:$0xff]  ;;  %v313_v29 = vld [vmem:[%s1470_s3 + $0x2d8] sm:$0xff] }
  0x2b   :  { %795 = vmatprep.subr.bf16.mxu0 %v794_v32  ;;  %v487_v32 = vld [vmem:[%s1472_s5 + $0x68] sm:$0xff]  ;;  %v312_v34 = vld [vmem:[%s1470_s3 + $0x2d0] sm:$0xff]  ;;  %v314_v40 = vld [vmem:[%s1470_s3 + $0x2e0] sm:$0xff] }
  0x2c   :  { %v873_v33 = vpack.c.bf16 %v487_v32, %v486_v31  ;;  %v846_v32 = vpack.c.bf16 %v313_v29, %v311_v28  ;;  %v315_v35 = vld [vmem:[%s1470_s3 + $0x2e8] sm:$0xff]  ;;  %v316_v41 = vld [vmem:[%s1470_s3 + $0x2f0] sm:$0xff]  ;;  %v318_v55 = vld [vmem:[%s1474_s4] sm:$0x3] }
  0x2d   :  { %862 = vmatpush1.bf16.msra.mxu1 %v861_v21 }
  0x2e   :  { %797 = vmatpush1.bf16.msra.mxu0 %v796_v37  ;;  %863 = vmatprep.subr.bf16.mxu1 %v905_v48  ;;  %v490_v37 = vld [vmem:[%s1472_s5 + $0x80] sm:$0xff] }
  0x2f   :  { %799 = vmatprep.subr.bf16.mxu0 %v798_v38  ;;  %v491_v38 = vld [vmem:[%s1472_s5 + $0x88] sm:$0xff] }
  0x30   :  { %v879_v39 = vpack.c.bf16 %v491_v38, %v490_v37 }
  0x31   :  { %865 = vmatpush1.bf16.msra.mxu1 %v864_v24  ;;  %v840_v24 = vpack.c.bf16 %v304_v20, %v302_v19 }
  0x32   :  { %801 = vmatpush1.bf16.msra.mxu0 %v800_v43  ;;  %866 = vmatprep.subr.bf16.mxu1 %v905_v48  ;;  %v59_v43 = vlaneseq }
  0x33   :  { %803 = vmatprep.subr.bf16.mxu0 %v802_v44 }
  0x34   :  { %v1315_v44 = vshrl.u32 %v59_v43, 7  ;;  %v852_v43 = vpack.c.bf16 %v316_v41, %v314_v40 }
  0x35   :  { %868 = vmatpush1.bf16.msra.mxu1 %v867_v27  ;;  %v308_v27 = vld [vmem:[%s1470_s3 + $0x2b0] sm:$0xff] }
  0x36   :  { %805 = vmatpush1.bf16.msra.mxu0 %v804_v50  ;;  %869 = vmatprep.subr.bf16.mxu1 %v905_v48  ;;  %v61_v45 = vsub.s32 0, %v1315_v44  ;;  %v65_v47 = vsub.s32 1, %v1315_v44  ;;  %v844_v31 = vpack.c.bf16 %v308_v27, %v306_v26 }
  0x37   :  { %807 = vmatprep.subr.bf16.mxu0 %v806_v51 }
  0x38   :  { %v62_v49 = vrot.slane %v1321_v46, %v61_v45  ;;  %v66_v50 = vrot.slane %v1321_v46, %v65_v47 }
  0x39   :  { %871 = vmatpush1.bf16.msra.mxu1 %v870_v30  ;;  %v69_v30 = vsub.s32 2, %v1315_v44  ;;  %v581_v44 = vld [vmem:[%s1475_s7 + $0x10] sm:$0xff] }
  0x3a   :  { %809 = vmatpush1.bf16.msra.mxu0 %v808_v56  ;;  %872 = vmatprep.subr.bf16.mxu1 %v905_v48 }
  0x3b   :  { %811 = vmatprep.subr.bf16.mxu0 %v810_v57  ;;  %v291_v57 = vld [vmem:[%s1470_s3 + $0x228] sm:$0xff]  ;;  %v70_v37 = vrot.slane %v1321_v46, %v69_v30  ;;  %v494_v46 = vld [vmem:[%s1472_s5 + $0xa0] sm:$0xff] }
  0x3d   :  { %874 = vmatpush1.bf16.msra.mxu1 %v873_v33  ;;  %v310_v33 = vld [vmem:[%s1470_s3 + $0x2c0] sm:$0xff] }
  0x3e   :  { %813 = vmatpush1.bf16.msra.mxu0 %v812_v62  ;;  %875 = vmatprep.subr.bf16.mxu1 %v905_v48  ;;  %v826_v62 = vpack.c.bf16 %v293_v58, %v291_v57  ;;  %v848_v38 = vpack.c.bf16 %v312_v34, %v310_v33  ;;  %v327_v57 = vrot.slane %v318_v55, %v65_v47 }
  0x3f   :  { %815 = vmatprep.subr.bf16.mxu0 %v814_v63  ;;  %v290_v63 = vld [vmem:[%s1470_s3 + $0x220] sm:$0xff] }
  0x40   :  { %v828_v4 = vpack.c.bf16 %v292_v0, %v290_v63 }
  0x41   :  { %877 = vmatpush1.bf16.msra.mxu1 %v876_v36  ;;  %v317_v36 = vld [vmem:[%s1470_s3 + $0x2f8] sm:$0xff] }
  0x42   :  { %817 = vmatpush1.bf16.msra.mxu0 %v816_v2  ;;  %878 = vmatprep.subr.bf16.mxu1 %v905_v48  ;;  %v297_v2 = vld [vmem:[%s1470_s3 + $0x258] sm:$0xff] }
  0x43   :  { %819 = vmatprep.subr.bf16.mxu0 %v818_v6  ;;  %v830_v5 = vpack.c.bf16 %v297_v2, %v295_v1  ;;  %v294_v6 = vld [vmem:[%s1470_s3 + $0x240] sm:$0xff] }
  0x44   :  { %v832_v10 = vpack.c.bf16 %v296_v7, %v294_v6 }
  0x45   :  { %880 = vmatpush1.bf16.msra.mxu1 %v879_v39  ;;  %v850_v39 = vpack.c.bf16 %v317_v36, %v315_v35 }
  0x46   :  { %821 = vmatpush1.bf16.msra.mxu0 %v820_v9  ;;  %881 = vmatprep.subr.bf16.mxu1 %v905_v48  ;;  %v301_v9 = vld [vmem:[%s1470_s3 + $0x278] sm:$0xff] }
  0x47   :  { %823 = vmatprep.subr.bf16.mxu0 %v822_v12  ;;  %v834_v11 = vpack.c.bf16 %v301_v9, %v299_v8  ;;  %v298_v12 = vld [vmem:[%s1470_s3 + $0x260] sm:$0xff] }
  0x48   :  { %v836_v16 = vpack.c.bf16 %v300_v13, %v298_v12 }
  0x49   :  { %883 = vmatpush1.bf16.msra.mxu1 %v882_v42 }
  0x4a   :  { %884 = vmatprep.subr.bf16.mxu1 %v905_v48 }
  0xe7   :  { %v144_v51 = vpop.f32.mrb[0].mxu1 }
  0xe8   :  { %v145_v52 = vadd.f32 %v144_v51, %v62_v49  ;;  %v146_v53 = vpop.f32.mrb[1].mxu1 }
  0xe9   :  { %v147_v56 = vadd.f32 %v146_v53, %v66_v50  ;;  %v495_v50 = vld [vmem:[%s1472_s5 + $0xa8] sm:$0xff]  ;;  %v497_v53 = vld [vmem:[%s1472_s5 + $0xb8] sm:$0xff] }
  0xea   :  { %v219_v61 = vmax.f32 %v145_v52, 0.0  ;;  %v885_v51 = vpack.c.bf16 %v495_v50, %v494_v46  ;;  %v496_v52 = vld [vmem:[%s1472_s5 + $0xb0] sm:$0xff] }
  0xeb   :  { %v220_v59 = vmax.f32 %v147_v56, 0.0  ;;  %v888_v54 = vpack.c.bf16 %v497_v53, %v496_v52  ;;  %v323_v56 = vrot.slane %v318_v55, %v61_v45  ;;  %v582_v45 = vld [vmem:[%s1475_s7 + $0x18] sm:$0xff] }
  0xec   :  { %886 = vmatpush1.bf16.msra.mxu1 %v885_v51  ;;  %v894_v47 = vpack.c.bf16 %v582_v45, %v581_v44 }
  0xed   :  { %394 = vmatprep.mubr.f32.mxu0 %v220_v59  ;;  %887 = vmatprep.subr.bf16.mxu1 %v905_v48 }
  0xee   :  { %395 = vmatmul.mubr.f32.vlgmr.msra.gmra.mrb[0].mxu0 %v219_v61  ;;  %v579_v61 = vld [vmem:[%s1475_s7] sm:$0xff] }
  0xef   :  { %825 = vmatpush1.bf16.msra.mxu0 %v824_v60  ;;  %465 = vmatprep.mubr.f32.mxu0 %v904_v3 }
  0xf0   :  { %827 = vmatprep.subr.bf16.mxu0 %v826_v62  ;;  %889 = vmatpush1.bf16.msra.mxu1 %v888_v54  ;;  %v580_v62 = vld [vmem:[%s1475_s7 + $0x8] sm:$0xff]  ;;  %s907_s7 = smov 120  }
  0xf1   :  { %890 = vmatprep.subr.bf16.mxu1 %v905_v48  ;;  %v891_v1 = vpack.c.bf16 %v580_v62, %v579_v61 }
  0xf3   :  { %829 = vmatpush1.bf16.msra.mxu0 %v828_v4  ;;  %v682_v4 = vld [vmem:[%s1476_s6] ss:$0 sm:$0xff] }
  0xf4   :  { %831 = vmatprep.subr.bf16.mxu0 %v830_v5 }
  0xf7   :  { %833 = vmatpush1.bf16.msra.mxu0 %v832_v10  ;;  %v215_v17 = vpop.f32.mrb[2].mxu1 }
  0xf8   :  { %835 = vmatprep.subr.bf16.mxu0 %v834_v11  ;;  %v718_v21 = vpop.f32.mrb[3].mxu1  ;;  %v216_v42 = vadd.f32 %v215_v17, %v70_v37 }
  0xfa   :  { %v221_v49 = vmax.f32 %v216_v42, 0.0 }
  0xfb   :  { %837 = vmatpush1.bf16.msra.mxu0 %v836_v16 }
  0xfc   :  { %839 = vmatprep.subr.bf16.mxu0 %v838_v18 }
  0xff   :  { %841 = vmatpush1.bf16.msra.mxu0 %v840_v24 }
 0x100   :  { %843 = vmatprep.subr.bf16.mxu0 %v842_v25 }
 0x103   :  { %845 = vmatpush1.bf16.msra.mxu0 %v844_v31 }
 0x104   :  { %847 = vmatprep.subr.bf16.mxu0 %v846_v32 }
 0x107   :  { %849 = vmatpush1.bf16.msra.mxu0 %v848_v38 }
 0x108   :  { %851 = vmatprep.subr.bf16.mxu0 %v850_v39 }
 0x10b   :  { %853 = vmatpush1.bf16.msra.mxu0 %v852_v43 }
 0x10e   :  { %466 = vmatmul.mubr.f32.vlgmr.msra.gmra.mrb[0].mxu0 %v221_v49 }
 0x1e1   :  { %v467_v58 = vpop.f32.mrb[0].mxu0 }
 0x1e2   :  { %v896_v59 = vadd.f32 %v467_v58, %v323_v56  ;;  %v469_v60 = vpop.f32.mrb[1].mxu0 }
 0x1e3   :  { %v897_v63 = vadd.f32 %v469_v60, %v327_v57 }
 0x1e4   :  { %v472_v2 = vmax.f32 %v896_v59, 0.0 }
 0x1e5   :  { %v473_v0 = vmax.f32 %v897_v63, 0.0 }
 0x1e7   :  { %683 = vmatprep.mubr.msk.f32.mxu1 %vm74_vm0, %v473_v0 }
 0x1e8   :  { %573 = vmatmul.mubr.f32.vlgmr.msra.gmra.mrb[4].mxu1 %v472_v2 }
 0x1e9   :  { %892 = vmatpush3.bf16.msra.mxu1 %v891_v1  ;;  %727 = vmatprep.mubr.msk.f32.mxu1 %vm906_vm1, %v904_v3 }
 0x1ea   :  { %893 = vmatprep.subr.bf16.mxu1 %v905_v48  ;;  %v684_v48 = vld [vmem:[%s1477_s8] ss:$0 sm:$0xff] }
 0x1ed   :  { %895 = vmatpush3.bf16.msra.mxu1 %v894_v47 }
 0x2bb   :  { %v574_v5 = vpop.f32.mrb[4].mxu1 }
 0x2bc   :  { %v575_v6 = vadd.f32 %v682_v4, %v574_v5  ;;  %v576_v7 = vpop.f32.mrb[5].mxu1 }
 0x2be   :  { %v578_v3 = vmax.f32 %v575_v6, 0.0 }
 0x2c0   :  { %728 = vmatmul.mubr.msk.f32.vlgmr.msra.gmra.mrb[6].mxu1 %vm590_vm2, %v578_v3 }
 0x393   :  { %v660_v8 = vpop.f32.mrb[6].mxu1 }
 0x394   :  { %v661_v9 = vadd.f32 %v684_v48, %v660_v8  ;;  %v729_v10 = vpop.f32.mrb[7].mxu1 }
 0x396   :  { %v664_v11 = vmax.f32 %v661_v9, 0.0 }
 0x398   :  { %666 = vrot.lane.b32.xlu0 %v664_v11, %s907_s7 }
 0x40a   :  { %v667_v12 = vpop.permute.xlu0 %666 }
 0x40b   :  { %v669_v13 = vmul.f32 %v667_v12, %v664_v11 }
 0x40d   :  { %v671_v14 = vsel %vm670_vm3, %v669_v13, 0.0 }
 0x40e   :  { %672 = vadd.xlane.f32.xlu0 %v671_v14 }
 0x49b   :  { %v673_v15 = vpop.xlane.xlu0 %672 }
 0x49c   :  { %675 = vst.msk [vmem:[%s1478_s9] sm:$0xff] %vm674_vm4, %v673_v15 }

</bundles_post_ra>
